<compile_context>
chip_gen: v5e
topology: v5e:2x2
jax: 0.10.0
libtpu: 0.0.40
codegen_flags: <defaults>
</compile_context>

<pallas_src>
import math
import functools

import jax
import jax.numpy as jnp
from jax import lax
from jax.experimental import pallas as pl
from jax.experimental.pallas import tpu as pltpu


# ----------------------------------------------------------------------------
# In-kernel helpers
# ----------------------------------------------------------------------------
def _attend_one(Qp_b, x_b, Vp_b, n_heads, embed_dim):
    """Attention for one batch element given re-associated projections.

    Qp_b: (n_query, H*D)   q @ Wqk   (norm factor already folded in)
    x_b : (T, D)           raw data rows (plays the role of K via re-association)
    Vp_b: (T, H*D)         x @ Wvo   (output projection already folded in)
    returns (n_query, D) float32
    """
    nq = Qp_b.shape[0]
    out_acc = jnp.zeros((nq, embed_dim), jnp.float32)
    # H is small and static -> fully unrolled; all slices are 32-lane-aligned,
    # 32-wide static slices; everything stays in vregs.
    for hh in range(n_heads):
        lo = hh * embed_dim
        # Scores: (q @ Wqk_h) @ x.T  -- contract last dims, no explicit transpose.
        U = lax.dot_general(
            Qp_b[:, lo:lo + embed_dim], x_b,
            dimension_numbers=(((1,), (1,)), ((), ())),
            preferred_element_type=jnp.float32)                      # (nq, T)
        # Exact f32 softmax along the graph axis (max-subtracted).
        U_max = jnp.max(U, axis=-1, keepdims=True)
        P = jnp.exp(U - U_max)
        A = P / jnp.sum(P, axis=-1, keepdims=True)                   # (nq, T)
        # Head contribution, output projection already folded into Vp.
        out_acc = out_acc + jnp.dot(
            A, Vp_b[:, lo:lo + embed_dim], preferred_element_type=jnp.float32)
    return out_acc


def _mha_kernel_per_batch(q_ref, h_ref, wqk_ref, wvo_ref, o_ref, *,
                          n_heads, embed_dim):
    """grid=(B,) path (multi-TensorCore chips): one batch element per step."""
    q = q_ref[0]                                                      # (nq, D)
    x = h_ref[0]                                                      # (T, D)
    Qp = jnp.dot(q, wqk_ref[...], preferred_element_type=jnp.float32)  # (nq, H*D)
    Vp = jnp.dot(x, wvo_ref[...], preferred_element_type=jnp.float32)  # (T, H*D)
    out = _attend_one(Qp, x, Vp, n_heads, embed_dim)
    o_ref[0] = out.astype(o_ref.dtype)                                # single store


def _mha_kernel_fused(q_ref, h_ref, wqk_ref, wvo_ref, o_ref, *,
                      n_heads, embed_dim, batch, n_query, target):
    """Single-invocation path (single-TensorCore chips): whole batch at once.

    Rows are flattened for the two projection matmuls (better sublane
    occupancy); the per-batch attention loop is static and fully unrolled.
    """
    D = embed_dim
    q_flat = q_ref[...].reshape(batch * n_query, D)                   # (B*nq, D)
    x_flat = h_ref[...].reshape(batch * target, D)                    # (B*T, D)
    Qp = jnp.dot(q_flat, wqk_ref[...], preferred_element_type=jnp.float32)  # (B*nq, H*D)
    Vp = jnp.dot(x_flat, wvo_ref[...], preferred_element_type=jnp.float32)  # (B*T, H*D)
    for b in range(batch):
        Qp_b = Qp[b * n_query:(b + 1) * n_query, :]
        x_b = x_flat[b * target:(b + 1) * target, :]
        Vp_b = Vp[b * target:(b + 1) * target, :]
        out = _attend_one(Qp_b, x_b, Vp_b, n_heads, D)
        o_ref[b] = out.astype(o_ref.dtype)


# ----------------------------------------------------------------------------
# Wrapper / parameter preparation
# ----------------------------------------------------------------------------
def prepare_mha_params(w_query, w_key, w_value, w_out):
    """One-time parameter prep (call at init time, NOT per forward).

    Returns re-associated stacked weights:
      Wqk: (D, H*D), column block h = (1/sqrt(kd)) * w_query[h] @ w_key[h].T
      Wvo: (D, H*D), column block h =               w_value[h] @ w_out[h]
    """
    H, D, kd = w_query.shape
    norm = 1.0 / math.sqrt(kd)
    Wqk = jnp.einsum("hdk,hek->hde", w_query, w_key) * norm   # (H, D, D)
    Wvo = jnp.einsum("hdk,hke->hde", w_value, w_out)          # (H, D, D)
    Wqk = jnp.transpose(Wqk, (1, 0, 2)).reshape(D, H * D)
    Wvo = jnp.transpose(Wvo, (1, 0, 2)).reshape(D, H * D)
    return Wqk, Wvo


def _single_tensorcore_chip():
    """True for v5e/v6e (1 TC per chip); False for v4/v5p/v7x (2 TCs)."""
    try:
        kind = jax.devices()[0].device_kind.lower()
    except Exception:
        return False
    return any(t in kind for t in
               ("v5e", "v5 lite", "v5lite", "v6e", "v6 lite", "v6lite"))


def multi_head_attention(q, h, Wqk, Wvo, *, n_heads):
    """q: (B, n_query, D); h: (B, T, D) or None (self-attention on q);
    Wqk/Wvo: (D, H*D) prepared once by prepare_mha_params()."""
    if h is None:
        h = q
    B, n_query, D = q.shape
    _, T, _ = h.shape
    HD = Wqk.shape[1]
    assert HD == n_heads * D

    if _single_tensorcore_chip():
        # v5e / v6e: one grid step, whole batch resident (tens of KB total).
        kernel = functools.partial(
            _mha_kernel_fused, n_heads=n_heads, embed_dim=D,
            batch=B, n_query=n_query, target=T)
        return pl.pallas_call(
            kernel,
            out_shape=jax.ShapeDtypeStruct((B, n_query, D), jnp.float32),
            grid_spec=pltpu.PrefetchScalarGridSpec(
                num_scalar_prefetch=0,
                grid=(1,),
                in_specs=[
                    pl.BlockSpec((B, n_query, D), lambda i: (0, 0, 0)),  # q (full)
                    pl.BlockSpec((B, T, D), lambda i: (0, 0, 0)),        # h (full)
                    pl.BlockSpec((D, HD), lambda i: (0, 0)),             # Wqk
                    pl.BlockSpec((D, HD), lambda i: (0, 0)),             # Wvo
                ],
                out_specs=pl.BlockSpec((B, n_query, D), lambda i: (0, 0, 0)),
            ),
            compiler_params=pltpu.CompilerParams(
                dimension_semantics=("arbitrary",)),
        )(q, h, Wqk, Wvo)

    # v7x / v4 / v5p: keep the parallel batch grid so both TensorCores get work.
    kernel = functools.partial(
        _mha_kernel_per_batch, n_heads=n_heads, embed_dim=D)
    return pl.pallas_call(
        kernel,
        out_shape=jax.ShapeDtypeStruct((B, n_query, D), jnp.float32),
        grid_spec=pltpu.PrefetchScalarGridSpec(
            num_scalar_prefetch=0,
            grid=(B,),
            in_specs=[
                pl.BlockSpec((1, n_query, D), lambda b: (b, 0, 0)),   # q (per batch)
                pl.BlockSpec((1, T, D), lambda b: (b, 0, 0)),         # h (per batch)
                pl.BlockSpec((D, HD), lambda b: (0, 0)),              # Wqk (resident)
                pl.BlockSpec((D, HD), lambda b: (0, 0)),              # Wvo (resident)
            ],
            out_specs=pl.BlockSpec((1, n_query, D), lambda b: (b, 0, 0)),
        ),
        compiler_params=pltpu.CompilerParams(
            dimension_semantics=("parallel",)),
    )(q, h, Wqk, Wvo)


# ----------------------------------------------------------------------------
# Pure-JAX reference (replicates the PyTorch forward, mask=None)
# ----------------------------------------------------------------------------
def multi_head_attention_ref(q, h, wq, wk, wv, wo):
    B, n_query, D = q.shape
    _, T, _ = h.shape
    H, _, kd = wq.shape
    norm = 1.0 / math.sqrt(kd)

    q_flat = q.reshape(-1, D)
    h_flat = h.reshape(-1, D)
    Q = jnp.einsum("nd,hdk->hnk", q_flat, wq).reshape(H, B, n_query, kd)
    K = jnp.einsum("nd,hdk->hnk", h_flat, wk).reshape(H, B, T, kd)
    V = jnp.einsum("nd,hdk->hnk", h_flat, wv).reshape(H, B, T, kd)
    U = norm * jnp.einsum("hbqk,hbtk->hbqt", Q, K)
    A = jax.nn.softmax(U, axis=-1)
    heads = jnp.einsum("hbqt,hbtv->hbqv", A, V)                    # (H,B,nq,kd)
    heads_p = jnp.transpose(heads, (1, 2, 0, 3)).reshape(B * n_query, H * kd)
    out = heads_p @ wo.reshape(H * kd, D)
    return out.reshape(B, n_query, D)


# ----------------------------------------------------------------------------
if __name__ == "__main__":
    # Small, forward-consistent shapes (embedding_dim=32, n_heads=8 -> kd=4).
    B, n_query, T = 2, 8, 8
    D, H = 32, 8
    kd = D // H

    key = jax.random.PRNGKey(0)
    kq, kh, k1, k2, k3, k4 = jax.random.split(key, 6)

    q = jax.random.normal(kq, (B, n_query, D), dtype=jnp.float32)
    h = jax.random.normal(kh, (B, T, D), dtype=jnp.float32)

    # Deterministic uniform(-stdv, stdv) init, matching init_parameters().
    stdv_k = 1.0 / math.sqrt(kd)
    stdv_o = 1.0 / math.sqrt(D)
    wq = jax.random.uniform(k1, (H, D, kd), jnp.float32, -stdv_k, stdv_k)
    wk = jax.random.uniform(k2, (H, D, kd), jnp.float32, -stdv_k, stdv_k)
    wv = jax.random.uniform(k3, (H, D, kd), jnp.float32, -stdv_k, stdv_k)
    wo = jax.random.uniform(k4, (H, kd, D), jnp.float32, -stdv_o, stdv_o)

    # One-time parameter preparation (hoisted out of the per-call path).
    Wqk, Wvo = jax.block_until_ready(prepare_mha_params(wq, wk, wv, wo))

    fwd = jax.jit(functools.partial(multi_head_attention, n_heads=H))
    out = jax.block_until_ready(fwd(q, h, Wqk, Wvo))

    ref = multi_head_attention_ref(q, h, wq, wk, wv, wo)
    assert out.shape == (B, n_query, D)
    # Exact softmax normalization (no approx reciprocal) -> tight f32 tolerance.
    assert jnp.allclose(out, ref, atol=1e-4, rtol=1e-4), "mismatch vs JAX reference"

    print("KERNEL_OK")
</pallas_src>

<mosaic_0001>
module attributes {stable_mosaic.version = 11 : i64} {
  func.func @_mha_kernel_per_batch(%arg0: i32, %arg1: memref<1x8x32xf32, #tpu.memory_space<vmem>>, %arg2: memref<1x8x32xf32, #tpu.memory_space<vmem>>, %arg3: memref<32x256xf32, #tpu.memory_space<vmem>>, %arg4: memref<32x256xf32, #tpu.memory_space<vmem>>, %arg5: memref<1x8x32xf32, #tpu.memory_space<vmem>>) attributes {dimension_semantics = [#tpu.dimension_semantics<parallel>], iteration_bounds = array<i64: 2>, scalar_prefetch = 0 : i64, scratch_operands = 0 : i64, tpu.core_type = #tpu.core_type<tc>, window_params = [{transform_indices = @transform_0, window_bounds = array<i64: 1, 8, 32>}, {transform_indices = @transform_1, window_bounds = array<i64: 1, 8, 32>}, {pipeline_mode = #tpu.pipeline_mode<synchronous>, transform_indices = @transform_2, window_bounds = array<i64: 32, 256>}, {pipeline_mode = #tpu.pipeline_mode<synchronous>, transform_indices = @transform_3, window_bounds = array<i64: 32, 256>}, {transform_indices = @transform_4, window_bounds = array<i64: 1, 8, 32>}]} {
    %c0 = arith.constant 0 : index
    %c0_0 = arith.constant 0 : index
    %c0_1 = arith.constant 0 : index
    %0 = vector.load %arg1[%c0, %c0_0, %c0_1] : memref<1x8x32xf32, #tpu.memory_space<vmem>>, vector<1x8x32xf32>
    %1 = vector.shape_cast %0 : vector<1x8x32xf32> to vector<8x32xf32>
    %c0_2 = arith.constant 0 : index
    %c0_3 = arith.constant 0 : index
    %c0_4 = arith.constant 0 : index
    %2 = vector.load %arg2[%c0_2, %c0_3, %c0_4] : memref<1x8x32xf32, #tpu.memory_space<vmem>>, vector<1x8x32xf32>
    %3 = vector.shape_cast %2 : vector<1x8x32xf32> to vector<8x32xf32>
    %c0_5 = arith.constant 0 : index
    %c0_6 = arith.constant 0 : index
    %4 = vector.load %arg3[%c0_5, %c0_6] : memref<32x256xf32, #tpu.memory_space<vmem>>, vector<32x256xf32>
    %cst = arith.constant dense<0.000000e+00> : vector<8x256xf32>
    %5 = tpu.matmul %1, %4, %cst {dimension_numbers = #tpu.dot_dimension_numbers<[1], [0], [0], [1], [0, 0, 1, 1], [], []>} : vector<8x32xf32>, vector<32x256xf32>, vector<8x256xf32> -> vector<8x256xf32>
    %c0_7 = arith.constant 0 : index
    %c0_8 = arith.constant 0 : index
    %6 = vector.load %arg4[%c0_7, %c0_8] : memref<32x256xf32, #tpu.memory_space<vmem>>, vector<32x256xf32>
    %cst_9 = arith.constant dense<0.000000e+00> : vector<8x256xf32>
    %7 = tpu.matmul %3, %6, %cst_9 {dimension_numbers = #tpu.dot_dimension_numbers<[1], [0], [0], [1], [0, 0, 1, 1], [], []>} : vector<8x32xf32>, vector<32x256xf32>, vector<8x256xf32> -> vector<8x256xf32>
    %cst_10 = arith.constant 0.000000e+00 : f32
    %8 = vector.broadcast %cst_10 : f32 to vector<8x32xf32>
    %9 = vector.extract_strided_slice %5 {offsets = [0, 0], sizes = [8, 32], strides = [1, 1]} : vector<8x256xf32> to vector<8x32xf32>
    %cst_11 = arith.constant dense<0.000000e+00> : vector<8x8xf32>
    %10 = tpu.matmul %9, %3, %cst_11 {dimension_numbers = #tpu.dot_dimension_numbers<[1], [1], [0], [0], [0, 0, 1, 0], [], []>} : vector<8x32xf32>, vector<8x32xf32>, vector<8x8xf32> -> vector<8x8xf32>
    %cst_12 = arith.constant dense<0xFF800000> : vector<8xf32>
    %11 = vector.multi_reduction <maximumf>, %10, %cst_12 [1] : vector<8x8xf32> to vector<8xf32>
    %12 = vector.shape_cast %11 : vector<8xf32> to vector<8x1xf32>
    %13 = vector.broadcast %12 : vector<8x1xf32> to vector<8x8xf32>
    %14 = arith.subf %10, %13 : vector<8x8xf32>
    %15 = math.exp %14 : vector<8x8xf32>
    %cst_13 = arith.constant dense<0.000000e+00> : vector<8xf32>
    %16 = vector.multi_reduction <add>, %15, %cst_13 [1] : vector<8x8xf32> to vector<8xf32>
    %17 = vector.shape_cast %16 : vector<8xf32> to vector<8x1xf32>
    %18 = vector.broadcast %17 : vector<8x1xf32> to vector<8x8xf32>
    %19 = arith.divf %15, %18 : vector<8x8xf32>
    %20 = vector.extract_strided_slice %7 {offsets = [0, 0], sizes = [8, 32], strides = [1, 1]} : vector<8x256xf32> to vector<8x32xf32>
    %cst_14 = arith.constant dense<0.000000e+00> : vector<8x32xf32>
    %21 = tpu.matmul %19, %20, %cst_14 {dimension_numbers = #tpu.dot_dimension_numbers<[1], [0], [0], [1], [0, 0, 1, 1], [], []>} : vector<8x8xf32>, vector<8x32xf32>, vector<8x32xf32> -> vector<8x32xf32>
    %22 = arith.addf %8, %21 : vector<8x32xf32>
    %23 = vector.extract_strided_slice %5 {offsets = [0, 32], sizes = [8, 32], strides = [1, 1]} : vector<8x256xf32> to vector<8x32xf32>
    %cst_15 = arith.constant dense<0.000000e+00> : vector<8x8xf32>
    %24 = tpu.matmul %23, %3, %cst_15 {dimension_numbers = #tpu.dot_dimension_numbers<[1], [1], [0], [0], [0, 0, 1, 0], [], []>} : vector<8x32xf32>, vector<8x32xf32>, vector<8x8xf32> -> vector<8x8xf32>
    %cst_16 = arith.constant dense<0xFF800000> : vector<8xf32>
    %25 = vector.multi_reduction <maximumf>, %24, %cst_16 [1] : vector<8x8xf32> to vector<8xf32>
    %26 = vector.shape_cast %25 : vector<8xf32> to vector<8x1xf32>
    %27 = vector.broadcast %26 : vector<8x1xf32> to vector<8x8xf32>
    %28 = arith.subf %24, %27 : vector<8x8xf32>
    %29 = math.exp %28 : vector<8x8xf32>
    %cst_17 = arith.constant dense<0.000000e+00> : vector<8xf32>
    %30 = vector.multi_reduction <add>, %29, %cst_17 [1] : vector<8x8xf32> to vector<8xf32>
    %31 = vector.shape_cast %30 : vector<8xf32> to vector<8x1xf32>
    %32 = vector.broadcast %31 : vector<8x1xf32> to vector<8x8xf32>
    %33 = arith.divf %29, %32 : vector<8x8xf32>
    %34 = vector.extract_strided_slice %7 {offsets = [0, 32], sizes = [8, 32], strides = [1, 1]} : vector<8x256xf32> to vector<8x32xf32>
    %cst_18 = arith.constant dense<0.000000e+00> : vector<8x32xf32>
    %35 = tpu.matmul %33, %34, %cst_18 {dimension_numbers = #tpu.dot_dimension_numbers<[1], [0], [0], [1], [0, 0, 1, 1], [], []>} : vector<8x8xf32>, vector<8x32xf32>, vector<8x32xf32> -> vector<8x32xf32>
    %36 = arith.addf %22, %35 : vector<8x32xf32>
    %37 = vector.extract_strided_slice %5 {offsets = [0, 64], sizes = [8, 32], strides = [1, 1]} : vector<8x256xf32> to vector<8x32xf32>
    %cst_19 = arith.constant dense<0.000000e+00> : vector<8x8xf32>
    %38 = tpu.matmul %37, %3, %cst_19 {dimension_numbers = #tpu.dot_dimension_numbers<[1], [1], [0], [0], [0, 0, 1, 0], [], []>} : vector<8x32xf32>, vector<8x32xf32>, vector<8x8xf32> -> vector<8x8xf32>
    %cst_20 = arith.constant dense<0xFF800000> : vector<8xf32>
    %39 = vector.multi_reduction <maximumf>, %38, %cst_20 [1] : vector<8x8xf32> to vector<8xf32>
    %40 = vector.shape_cast %39 : vector<8xf32> to vector<8x1xf32>
    %41 = vector.broadcast %40 : vector<8x1xf32> to vector<8x8xf32>
    %42 = arith.subf %38, %41 : vector<8x8xf32>
    %43 = math.exp %42 : vector<8x8xf32>
    %cst_21 = arith.constant dense<0.000000e+00> : vector<8xf32>
    %44 = vector.multi_reduction <add>, %43, %cst_21 [1] : vector<8x8xf32> to vector<8xf32>
    %45 = vector.shape_cast %44 : vector<8xf32> to vector<8x1xf32>
    %46 = vector.broadcast %45 : vector<8x1xf32> to vector<8x8xf32>
    %47 = arith.divf %43, %46 : vector<8x8xf32>
    %48 = vector.extract_strided_slice %7 {offsets = [0, 64], sizes = [8, 32], strides = [1, 1]} : vector<8x256xf32> to vector<8x32xf32>
    %cst_22 = arith.constant dense<0.000000e+00> : vector<8x32xf32>
    %49 = tpu.matmul %47, %48, %cst_22 {dimension_numbers = #tpu.dot_dimension_numbers<[1], [0], [0], [1], [0, 0, 1, 1], [], []>} : vector<8x8xf32>, vector<8x32xf32>, vector<8x32xf32> -> vector<8x32xf32>
    %50 = arith.addf %36, %49 : vector<8x32xf32>
    %51 = vector.extract_strided_slice %5 {offsets = [0, 96], sizes = [8, 32], strides = [1, 1]} : vector<8x256xf32> to vector<8x32xf32>
    %cst_23 = arith.constant dense<0.000000e+00> : vector<8x8xf32>
    %52 = tpu.matmul %51, %3, %cst_23 {dimension_numbers = #tpu.dot_dimension_numbers<[1], [1], [0], [0], [0, 0, 1, 0], [], []>} : vector<8x32xf32>, vector<8x32xf32>, vector<8x8xf32> -> vector<8x8xf32>
    %cst_24 = arith.constant dense<0xFF800000> : vector<8xf32>
    %53 = vector.multi_reduction <maximumf>, %52, %cst_24 [1] : vector<8x8xf32> to vector<8xf32>
    %54 = vector.shape_cast %53 : vector<8xf32> to vector<8x1xf32>
    %55 = vector.broadcast %54 : vector<8x1xf32> to vector<8x8xf32>
    %56 = arith.subf %52, %55 : vector<8x8xf32>
    %57 = math.exp %56 : vector<8x8xf32>
    %cst_25 = arith.constant dense<0.000000e+00> : vector<8xf32>
    %58 = vector.multi_reduction <add>, %57, %cst_25 [1] : vector<8x8xf32> to vector<8xf32>
    %59 = vector.shape_cast %58 : vector<8xf32> to vector<8x1xf32>
    %60 = vector.broadcast %59 : vector<8x1xf32> to vector<8x8xf32>
    %61 = arith.divf %57, %60 : vector<8x8xf32>
    %62 = vector.extract_strided_slice %7 {offsets = [0, 96], sizes = [8, 32], strides = [1, 1]} : vector<8x256xf32> to vector<8x32xf32>
    %cst_26 = arith.constant dense<0.000000e+00> : vector<8x32xf32>
    %63 = tpu.matmul %61, %62, %cst_26 {dimension_numbers = #tpu.dot_dimension_numbers<[1], [0], [0], [1], [0, 0, 1, 1], [], []>} : vector<8x8xf32>, vector<8x32xf32>, vector<8x32xf32> -> vector<8x32xf32>
    %64 = arith.addf %50, %63 : vector<8x32xf32>
    %65 = vector.extract_strided_slice %5 {offsets = [0, 128], sizes = [8, 32], strides = [1, 1]} : vector<8x256xf32> to vector<8x32xf32>
    %cst_27 = arith.constant dense<0.000000e+00> : vector<8x8xf32>
    %66 = tpu.matmul %65, %3, %cst_27 {dimension_numbers = #tpu.dot_dimension_numbers<[1], [1], [0], [0], [0, 0, 1, 0], [], []>} : vector<8x32xf32>, vector<8x32xf32>, vector<8x8xf32> -> vector<8x8xf32>
    %cst_28 = arith.constant dense<0xFF800000> : vector<8xf32>
    %67 = vector.multi_reduction <maximumf>, %66, %cst_28 [1] : vector<8x8xf32> to vector<8xf32>
    %68 = vector.shape_cast %67 : vector<8xf32> to vector<8x1xf32>
    %69 = vector.broadcast %68 : vector<8x1xf32> to vector<8x8xf32>
    %70 = arith.subf %66, %69 : vector<8x8xf32>
    %71 = math.exp %70 : vector<8x8xf32>
    %cst_29 = arith.constant dense<0.000000e+00> : vector<8xf32>
    %72 = vector.multi_reduction <add>, %71, %cst_29 [1] : vector<8x8xf32> to vector<8xf32>
    %73 = vector.shape_cast %72 : vector<8xf32> to vector<8x1xf32>
    %74 = vector.broadcast %73 : vector<8x1xf32> to vector<8x8xf32>
    %75 = arith.divf %71, %74 : vector<8x8xf32>
    %76 = vector.extract_strided_slice %7 {offsets = [0, 128], sizes = [8, 32], strides = [1, 1]} : vector<8x256xf32> to vector<8x32xf32>
    %cst_30 = arith.constant dense<0.000000e+00> : vector<8x32xf32>
    %77 = tpu.matmul %75, %76, %cst_30 {dimension_numbers = #tpu.dot_dimension_numbers<[1], [0], [0], [1], [0, 0, 1, 1], [], []>} : vector<8x8xf32>, vector<8x32xf32>, vector<8x32xf32> -> vector<8x32xf32>
    %78 = arith.addf %64, %77 : vector<8x32xf32>
    %79 = vector.extract_strided_slice %5 {offsets = [0, 160], sizes = [8, 32], strides = [1, 1]} : vector<8x256xf32> to vector<8x32xf32>
    %cst_31 = arith.constant dense<0.000000e+00> : vector<8x8xf32>
    %80 = tpu.matmul %79, %3, %cst_31 {dimension_numbers = #tpu.dot_dimension_numbers<[1], [1], [0], [0], [0, 0, 1, 0], [], []>} : vector<8x32xf32>, vector<8x32xf32>, vector<8x8xf32> -> vector<8x8xf32>
    %cst_32 = arith.constant dense<0xFF800000> : vector<8xf32>
    %81 = vector.multi_reduction <maximumf>, %80, %cst_32 [1] : vector<8x8xf32> to vector<8xf32>
    %82 = vector.shape_cast %81 : vector<8xf32> to vector<8x1xf32>
    %83 = vector.broadcast %82 : vector<8x1xf32> to vector<8x8xf32>
    %84 = arith.subf %80, %83 : vector<8x8xf32>
    %85 = math.exp %84 : vector<8x8xf32>
    %cst_33 = arith.constant dense<0.000000e+00> : vector<8xf32>
    %86 = vector.multi_reduction <add>, %85, %cst_33 [1] : vector<8x8xf32> to vector<8xf32>
    %87 = vector.shape_cast %86 : vector<8xf32> to vector<8x1xf32>
    %88 = vector.broadcast %87 : vector<8x1xf32> to vector<8x8xf32>
    %89 = arith.divf %85, %88 : vector<8x8xf32>
    %90 = vector.extract_strided_slice %7 {offsets = [0, 160], sizes = [8, 32], strides = [1, 1]} : vector<8x256xf32> to vector<8x32xf32>
    %cst_34 = arith.constant dense<0.000000e+00> : vector<8x32xf32>
    %91 = tpu.matmul %89, %90, %cst_34 {dimension_numbers = #tpu.dot_dimension_numbers<[1], [0], [0], [1], [0, 0, 1, 1], [], []>} : vector<8x8xf32>, vector<8x32xf32>, vector<8x32xf32> -> vector<8x32xf32>
    %92 = arith.addf %78, %91 : vector<8x32xf32>
    %93 = vector.extract_strided_slice %5 {offsets = [0, 192], sizes = [8, 32], strides = [1, 1]} : vector<8x256xf32> to vector<8x32xf32>
    %cst_35 = arith.constant dense<0.000000e+00> : vector<8x8xf32>
    %94 = tpu.matmul %93, %3, %cst_35 {dimension_numbers = #tpu.dot_dimension_numbers<[1], [1], [0], [0], [0, 0, 1, 0], [], []>} : vector<8x32xf32>, vector<8x32xf32>, vector<8x8xf32> -> vector<8x8xf32>
    %cst_36 = arith.constant dense<0xFF800000> : vector<8xf32>
    %95 = vector.multi_reduction <maximumf>, %94, %cst_36 [1] : vector<8x8xf32> to vector<8xf32>
    %96 = vector.shape_cast %95 : vector<8xf32> to vector<8x1xf32>
    %97 = vector.broadcast %96 : vector<8x1xf32> to vector<8x8xf32>
    %98 = arith.subf %94, %97 : vector<8x8xf32>
    %99 = math.exp %98 : vector<8x8xf32>
    %cst_37 = arith.constant dense<0.000000e+00> : vector<8xf32>
    %100 = vector.multi_reduction <add>, %99, %cst_37 [1] : vector<8x8xf32> to vector<8xf32>
    %101 = vector.shape_cast %100 : vector<8xf32> to vector<8x1xf32>
    %102 = vector.broadcast %101 : vector<8x1xf32> to vector<8x8xf32>
    %103 = arith.divf %99, %102 : vector<8x8xf32>
    %104 = vector.extract_strided_slice %7 {offsets = [0, 192], sizes = [8, 32], strides = [1, 1]} : vector<8x256xf32> to vector<8x32xf32>
    %cst_38 = arith.constant dense<0.000000e+00> : vector<8x32xf32>
    %105 = tpu.matmul %103, %104, %cst_38 {dimension_numbers = #tpu.dot_dimension_numbers<[1], [0], [0], [1], [0, 0, 1, 1], [], []>} : vector<8x8xf32>, vector<8x32xf32>, vector<8x32xf32> -> vector<8x32xf32>
    %106 = arith.addf %92, %105 : vector<8x32xf32>
    %107 = vector.extract_strided_slice %5 {offsets = [0, 224], sizes = [8, 32], strides = [1, 1]} : vector<8x256xf32> to vector<8x32xf32>
    %cst_39 = arith.constant dense<0.000000e+00> : vector<8x8xf32>
    %108 = tpu.matmul %107, %3, %cst_39 {dimension_numbers = #tpu.dot_dimension_numbers<[1], [1], [0], [0], [0, 0, 1, 0], [], []>} : vector<8x32xf32>, vector<8x32xf32>, vector<8x8xf32> -> vector<8x8xf32>
    %cst_40 = arith.constant dense<0xFF800000> : vector<8xf32>
    %109 = vector.multi_reduction <maximumf>, %108, %cst_40 [1] : vector<8x8xf32> to vector<8xf32>
    %110 = vector.shape_cast %109 : vector<8xf32> to vector<8x1xf32>
    %111 = vector.broadcast %110 : vector<8x1xf32> to vector<8x8xf32>
    %112 = arith.subf %108, %111 : vector<8x8xf32>
    %113 = math.exp %112 : vector<8x8xf32>
    %cst_41 = arith.constant dense<0.000000e+00> : vector<8xf32>
    %114 = vector.multi_reduction <add>, %113, %cst_41 [1] : vector<8x8xf32> to vector<8xf32>
    %115 = vector.shape_cast %114 : vector<8xf32> to vector<8x1xf32>
    %116 = vector.broadcast %115 : vector<8x1xf32> to vector<8x8xf32>
    %117 = arith.divf %113, %116 : vector<8x8xf32>
    %118 = vector.extract_strided_slice %7 {offsets = [0, 224], sizes = [8, 32], strides = [1, 1]} : vector<8x256xf32> to vector<8x32xf32>
    %cst_42 = arith.constant dense<0.000000e+00> : vector<8x32xf32>
    %119 = tpu.matmul %117, %118, %cst_42 {dimension_numbers = #tpu.dot_dimension_numbers<[1], [0], [0], [1], [0, 0, 1, 1], [], []>} : vector<8x8xf32>, vector<8x32xf32>, vector<8x32xf32> -> vector<8x32xf32>
    %120 = arith.addf %106, %119 : vector<8x32xf32>
    %c0_43 = arith.constant 0 : index
    %c0_44 = arith.constant 0 : index
    %c0_45 = arith.constant 0 : index
    %121 = vector.load %arg5[%c0_43, %c0_44, %c0_45] : memref<1x8x32xf32, #tpu.memory_space<vmem>>, vector<1x8x32xf32>
    %122 = vector.shape_cast %121 : vector<1x8x32xf32> to vector<8x32xf32>
    %123 = vector.shape_cast %120 : vector<8x32xf32> to vector<1x8x32xf32>
    tpu.vector_store %arg5[%c0_43, %c0_44, %c0_45], %123 {strides = array<i32>} : memref<1x8x32xf32, #tpu.memory_space<vmem>>, vector<1x8x32xf32>,
    return
  }
  func.func @transform_0(%arg0: i32) -> (i32, i32, i32) {
    %c0_i32 = arith.constant 0 : i32
    %c0_i32_0 = arith.constant 0 : i32
    %c0_i32_1 = arith.constant 0 : i32
    return %arg0, %c0_i32, %c0_i32_0 : i32, i32, i32
  }
  func.func @transform_1(%arg0: i32) -> (i32, i32, i32) {
    %c0_i32 = arith.constant 0 : i32
    %c0_i32_0 = arith.constant 0 : i32
    %c0_i32_1 = arith.constant 0 : i32
    return %arg0, %c0_i32, %c0_i32_0 : i32, i32, i32
  }
  func.func @transform_2(%arg0: i32) -> (i32, i32) {
    %c0_i32 = arith.constant 0 : i32
    %c0_i32_0 = arith.constant 0 : i32
    %c0_i32_1 = arith.constant 0 : i32
    return %c0_i32, %c0_i32_0 : i32, i32
  }
  func.func @transform_3(%arg0: i32) -> (i32, i32) {
    %c0_i32 = arith.constant 0 : i32
    %c0_i32_0 = arith.constant 0 : i32
    %c0_i32_1 = arith.constant 0 : i32
    return %c0_i32, %c0_i32_0 : i32, i32
  }
  func.func @transform_4(%arg0: i32) -> (i32, i32, i32) {
    %c0_i32 = arith.constant 0 : i32
    %c0_i32_0 = arith.constant 0 : i32
    %c0_i32_1 = arith.constant 0 : i32
    return %arg0, %c0_i32, %c0_i32_0 : i32, i32, i32
  }
}

</mosaic_0001>

<bundles_post_ra>
// kernel: multi_head_attention.1
= control target key start
LH: loop header
LB: loop body
LE: loop exit
PB: predicated region body
PF: predicated region fallthrough
CT: control target
= control target key end

     0   :  { %s1813_s0 = inlined_call_operand.hbm [shape: f32[2,8,32], index: 0, kind: input, shape index: {}]   ;;  %s1814_s1 = inlined_call_operand.hbm [shape: f32[2,8,32], index: 1, kind: input, shape index: {}]   ;;  %s1815_s2 = inlined_call_operand.hbm [shape: f32[32,256], index: 2, kind: input, shape index: {}]   ;;  %s1816_s3 = inlined_call_operand.hbm [shape: f32[32,256], index: 3, kind: input, shape index: {}]   ;;  %s1817_s4 = inlined_call_operand.hbm [shape: f32[2,8,32], index: 4, kind: output, shape index: {}]  }
   0x1   :  { %1818 = sst [smem:[#allocation17_spill]] %s1815_s2 }
   0x2   :  { %1819 = sst [smem:[#allocation18_spill]] %s1816_s3 }
   0x3   :  { %9 = vsyncpa [#allocation3], 0 }
   0x4   :  { %11 = vsyncpa [#allocation3 + $0x1], 0 }
   0x5   :  { %12 = vsyncpa [#allocation6], 0 }
   0x6   :  { %14 = vsyncpa [#allocation6 + $0x1], 0 }
   0x7   :  { %15 = vsyncpa [#allocation9], 0 }
   0x8   :  { %16 = vsyncpa [#allocation4], 0 }
   0x9   :  { %18 = vsyncpa [#allocation4 + $0x1], 0  ;;  %s1502_s15 = smov 0   ;;  %s1504_s16 = smov 0  }
   0xa   :  { %s1506_s17 = smov 0   ;;  %s1508_s18 = smov 0  }
   0xb LB: > { %s1820_s2 = sld [smem:[#allocation17_spill]]  ;;  %s1526_s22 = sadd.s32 4294967295, %s1468_s18   ;;  %s1468_s18 = sphi %s1508_s18, %s1834_s18   ;;  %s1464_s17 = sphi %s1506_s17, %s1833_s17   ;;  %s1460_s16 = sphi %s1504_s16, %s1832_s16   ;;  %s1456_s15 = sphi %s1502_s15, %s1831_s15  }
   0xc   : > { %p1115_p0 = scmp.ge.s32.totalorder %s1468_s18, 1  ;;  %p45_p1 = scmp.eq.s32.totalorder %s1526_s22, 0 }
   0xd   : > { %p149_p2 = scmp.lt.s32.totalorder %s1468_s18, 3  ;;  %s1470_s24 = smov [#allocation7]  }
   0xe   : > { %s162_s25 = sshll.u32 %s1470_s24, 4  ;;  %s1822_s3 = sld [smem:[#allocation18_spill]]  ;;  %s163_s25 = int_to_ptr.vmem [resolvable:$true] %s162_s25 }
   0xf   : > { %p1531_p3 = pnand %p1115_p0, %p149_p2  ;;  %s1471_s29 = smov [#allocation8]  }
  0x10   : > { %s176_s30 = sshll.u32 %s1471_s29, 4  ;;  %s1472_s5 = smov 256   ;;  %s177_s30 = int_to_ptr.vmem [resolvable:$true] %s176_s30 }
  0x11   : > { %s160_s21 = sshll.u32 %s1820_s2, 4  ;;  %p1175_p4 = pneg %p1531_p3  ;;  %s161_s21 = int_to_ptr.hbm [resolvable:$true] %s160_s21 }
  0x12   : > { %s1473_s6 = smov 16   ;;  %s1114_s7 = sadd.s32 4294967294, %s1468_s18  }
  0x13   : > { %p1176_p6 = pnand %p1175_p4, %p45_p1  ;;  %s1545_s8 = sadd.s32 1, %s1468_s18  }
  0x14   : > { %s174_s28 = sshll.u32 %s1822_s3, 4  ;;  %s28_s9 = ssub.s32 %s1468_s18, %s1545_s8  ;;  %s175_s28 = int_to_ptr.hbm [resolvable:$true] %s174_s28 }
  0x15   : > { %1178 = dma.hbm_to_vmem [thread:$0]  (!%p1176_p6), %s161_s21, 1024, %s163_s25, [#allocation6], %s1472_s5, %s1472_s5, %s1473_s6  }
  0x16   : > { %1181 = dma.hbm_to_vmem [thread:$0]  (!%p1176_p6), %s175_s28, 1024, %s177_s30, [#allocation9], %s1472_s5, %s1472_s5, %s1473_s6  }
  0x17   : > { %s31_s10 = sadd.s32 1, %s1464_s17  ;;  %p29_p7 = scmp.eq.s32.totalorder %s28_s9, 0 }
  0x18   : > { %p38_p8 = scmp.ne.s32.totalorder %s1464_s17, %s1460_s16  ;;  %p39_p9 = scmp.eq.s32.totalorder %s1468_s18, 0 }
  0x19   : > { %p44_p10 = scmp.ne.s32.totalorder %s1460_s16, %s1456_s15  ;;  %p136_p13 = scmp.eq.s32.totalorder %s1526_s22, 1 }
  0x1a   : > { %s1556_s11 = scalar_select %p29_p7, %s1464_s17, %s31_s10  }
  0x1b   : > { %p1558_p11 = por %p39_p9, %p38_p8  ;;  %p1564_p12 = por %p45_p1, %p44_p10 }
  0x1c   : > { %1823 = sst [smem:[#allocation16_spill]] %s1556_s11  ;;  %p142_p0 = scmp.eq.s32.totalorder %s1114_s7, 1 }
  0x1d   : > { %p1195_p2 = scmp.lt.s32.totalorder %s1468_s18, 2  ;;  %s190_s14 = sand.u32 1, %s1464_s17  }
  0x1e   : > { %p1571_p4 = por %p136_p13, %p38_p8  ;;  %p1575_p6 = por %p142_p0, %p44_p10 }
  0x1f   : > { %s1579_s21 = sshll.u32 %s190_s14, 3  ;;  %s1120_s24 = sshll.u32 %s1468_s18, 3 }
  0x20   : > { %s198_s27 = scalar_lea.hbm %s1813_s0, %s1120_s24  ;;  %s194_s28 = scalar_lea.vmem [#allocation2], %s1579_s21 }
  0x21   : > { %s202_s29 = sshll.u32 %s194_s28, 4  ;;  %s200_s30 = sshll.u32 %s198_s27, 4  ;;  %s203_s29 = int_to_ptr.vmem [resolvable:$true] %s202_s29  ;;  %s201_s30 = int_to_ptr.hbm [resolvable:$true] %s200_s30 }
  0x22   : > { %p1588_p7 = pnand %p1195_p2, %p1558_p11  ;;  %s217_s9 = scalar_lea.hbm %s1814_s1, %s1120_s24 }
  0x23   : > { %s209_s10 = sand.u32 1, %s1468_s18   ;;  %s191_s2 = scalar_lea.sflag [#allocation3], %s190_s14 }
  0x24   : > { %s1330_s25 = sshra.s32 %s201_s30, 4  ;;  %p1334_p9 = pneg %p1588_p7  ;;  %s1331_s25 = int_to_ptr.hbm [resolvable:$true] %s1330_s25 }
  0x25   : > { %s1332_s26 = scalar_lea.hbm %s1331_s25, 8  ;;  %s1337_s28 = scalar_lea.hbm %s1813_s0, 16 }
  0x26   : > { %p1333_p8 = scmp.ne.s32.totalorder %s1331_s25, %s1332_s26  ;;  %p1338_p13 = scmp.lt.s32.totalorder %s1331_s25, %s1813_s0 }
  0x27   : > { %p1339_p0 = scmp.lt.s32.totalorder %s1337_s28, %s1332_s26 }
  0x28   : > { %p1335_p10 = pnand %p1334_p9, %p1333_p8 }
  0x29   : > { %p1340_p2 = por %p1339_p0, %p1338_p13 }
  0x2a   : > { %p1336_p11 = pneg %p1335_p10 }
  0x2c   : > { %p1341_p5 = pnand %p1340_p2, %p1336_p11 }
  0x2e   : > { %1344 = shalt.err (!%p1341_p5)
}
  0x2f   : > { %1185 = dma.hbm_to_vmem [thread:$0]  (!%p1588_p7), %s201_s30, 128, %s203_s29, %s191_s2  }
  0x30   : > { %s219_s14 = sshll.u32 %s217_s9, 4  ;;  %s213_s24 = scalar_lea.vmem [#allocation5], %s1579_s21  ;;  %s220_s14 = int_to_ptr.hbm [resolvable:$true] %s219_s14 }
  0x31   : > { %s221_s3 = sshll.u32 %s213_s24, 4  ;;  %s210_s12 = scalar_lea.sflag [#allocation6], %s209_s10  ;;  %s222_s3 = int_to_ptr.vmem [resolvable:$true] %s221_s3 }
  0x32   : > { %s1360_s27 = sshra.s32 %s220_s14, 4  ;;  %s1367_s28 = scalar_lea.hbm %s1814_s1, 16  ;;  %s1361_s27 = int_to_ptr.hbm [resolvable:$true] %s1360_s27 }
  0x33   : > { %s1362_s11 = scalar_lea.hbm %s1361_s27, 8  ;;  %p1368_p5 = scmp.lt.s32.totalorder %s1361_s27, %s1814_s1 }
  0x34   : > { %p1363_p8 = scmp.ne.s32.totalorder %s1361_s27, %s1362_s11  ;;  %p1369_p13 = scmp.lt.s32.totalorder %s1367_s28, %s1362_s11 }
  0x36   : > { %p1365_p10 = pnand %p1363_p8, %p1334_p9  ;;  %p1370_p0 = por %p1369_p13, %p1368_p5 }
  0x38   : > { %p1366_p11 = pneg %p1365_p10 }
  0x3a   : > { %p1371_p2 = pnand %p1370_p0, %p1366_p11 }
  0x3c   : > { %1374 = shalt.err (!%p1371_p2)
}
  0x3d   : > { %1188 = dma.hbm_to_vmem [thread:$0]  (!%p1588_p7), %s220_s14, 128, %s222_s3, %s210_s12  }
  0x3e   : > { %230 = sbr.rel (%p1531_p3) target bundleno = 1279 (0x4ff), region = 36  ;;  %s1624_s21 = sand.u32 (!%p1531_p3), 1, %s1460_s16  }
  0x3f   : > { %s1627_s29 = sshll.u32 (!%p1531_p3), %s1624_s21, 3  ;;  %s233_s30 = scalar_lea.sflag (!%p1531_p3), [#allocation3], %s1624_s21 }
  0x40   : > { %s236_s11 = scalar_lea.vmem (!%p1531_p3), [#allocation2], %s1627_s29 }
  0x43   : > { %1435 = dma.done.wait (%p1564_p12), %s233_s30, 128  }
  0x44   : > { %1437 = vsyncadd (%p1564_p12), %s233_s30, 4294967168  ;;  %s242_s3 = sand.u32 1, %s1526_s22   ;;  %s246_s5 = scalar_lea.vmem [#allocation5], %s1627_s29 }
  0x45   : > { %s243_s23 = scalar_lea.sflag [#allocation6], %s242_s3 }
  0x46   : > { %1439 = dma.done.wait (%p1564_p12), %s243_s23, 128  }
  0x47   : > { %1441 = vsyncadd (%p1564_p12), %s243_s23, 4294967168 }
  0x48   : > { %1443 = dma.done.wait (%p45_p1), [#allocation6], 1024  }
  0x49   : > { %1445 = vsyncadd (%p45_p1), [#allocation6], 4294966272 }
  0x4a   : > { %1447 = dma.done.wait (%p45_p1), [#allocation9], 1024  }
  0x4b   : > { %1449 = vsyncadd (%p45_p1), [#allocation9], 4294966272  ;;  %v295_v0 = vld [vmem:[#allocation7 + $0x30] sm:$0xff]  ;;  %v293_v1 = vld [vmem:[#allocation7 + $0x20] sm:$0xff]  ;;  %vm297_vm0 = vcmask 261120   ;;  %s1474_s13 = smov 32  }
  0x4c   : > { %313 = vmatpush.msra.mxu0 %v295_v0  ;;  %v296_v2 = vld [vmem:[#allocation7 + $0x38] sm:$0xff]  ;;  %v291_v3 = vld [vmem:[#allocation7 + $0x10] sm:$0xff]  ;;  %v294_v4 = vld [vmem:[#allocation7 + $0x28] sm:$0xff]  ;;  %s1475_s9 = smov 96   ;;  %s1476_s10 = smov 64   ;;  %vm415_vm1 = vcmask 64512  }
  0x4d   : > { %333 = vmatpush.msra.mxu1 %v296_v2  ;;  %v292_v5 = vld [vmem:[#allocation7 + $0x18] sm:$0xff]  ;;  %v289_v6 = vld [vmem:[#allocation7] sm:$0xff]  ;;  %v290_v8 = vld [vmem:[#allocation7 + $0x8] sm:$0xff]  ;;  %s1158_s7 = sshll.u32 %s1526_s22, 3  ;;  %s286_s27 = scalar_lea.vmem [#allocation10], %s1627_s29 }
  0x4e   : > { %314 = vmatpush.msra.mxu0 %v293_v1  ;;  %v287_v7 = vld [vmem:[%s236_s11] sm:$0xff]  ;;  %v1649_v9 = vld [vmem:[%s246_s5] sm:$0xff]  ;;  %s997_s12 = scalar_lea.hbm %s1817_s4, %s1158_s7  ;;  %s999_s25 = sshll.u32 %s286_s27, 4  ;;  %s1000_s25 = int_to_ptr.vmem [resolvable:$true] %s999_s25 }
  0x4f   : > { %334 = vmatpush.msra.mxu1 %v294_v4  ;;  %v347_v16 = vld [vmem:[#allocation8 + $0x30] sm:$0xff]  ;;  %v345_v17 = vld [vmem:[#allocation8 + $0x20] sm:$0xff]  ;;  %v348_v29 = vld [vmem:[#allocation8 + $0x38] sm:$0xff]  ;;  %s1001_s26 = sshll.u32 %s997_s12, 4  ;;  %s987_s28 = scalar_lea.sflag [#allocation4], %s1624_s21  ;;  %s1002_s26 = int_to_ptr.hbm [resolvable:$true] %s1001_s26 }
  0x50   : > { %315 = vmatpush.msra.mxu0 %v291_v3  ;;  %364 = vmatpush.msra.mxu2 %v347_v16  ;;  %v343_v18 = vld [vmem:[#allocation8 + $0x10] sm:$0xff]  ;;  %v341_v19 = vld [vmem:[#allocation8] sm:$0xff]  ;;  %v346_v30 = vld [vmem:[#allocation8 + $0x28] sm:$0xff]  ;;  %s1404_s22 = sshra.s32 %s1002_s26, 4  ;;  %s1410_s29 = scalar_lea.hbm %s1817_s4, 16  ;;  %s1405_s22 = int_to_ptr.hbm [resolvable:$true] %s1404_s22 }
  0x51   : > { %335 = vmatpush.msra.mxu1 %v292_v5  ;;  %384 = vmatpush.msra.mxu3 %v348_v29  ;;  %v344_v31 = vld [vmem:[#allocation8 + $0x18] sm:$0xff]  ;;  %v342_v32 = vld [vmem:[#allocation8 + $0x8] sm:$0xff]  ;;  %s1406_s6 = scalar_lea.hbm %s1405_s22, 8  ;;  %p1411_p7 = scmp.lt.s32.totalorder %s1405_s22, %s1817_s4 }
  0x52   : > { %316 = vmatpush.msra.mxu0 %v289_v6  ;;  %365 = vmatpush.msra.mxu2 %v345_v17  ;;  %p1407_p1 = scmp.ne.s32.totalorder %s1405_s22, %s1406_s6  ;;  %p1412_p9 = scmp.lt.s32.totalorder %s1410_s29, %s1406_s6 }
  0x53   : > { %1129 = vmatmul.msk.f32.vlgmr.msra.gmra.mxu0 %vm297_vm0, %v287_v7  ;;  %336 = vmatpush.msra.mxu1 %v290_v8 }
  0x54   : > { %1130 = vmatmul.msk.f32.vlgmr.msra.gmra.mxu1 %vm297_vm0, %v287_v7  ;;  %1133 = vmatpush.xpose.msk.msrb.mxu0 %vm297_vm0, %v1649_v9  ;;  %p1408_p3 = pnand %p1407_p1, %p1571_p4  ;;  %p1413_p8 = por %p1412_p9, %p1411_p7 }
  0x55   : > { %1135 = vmatpush.xpose.msk.msrb.mxu1 %vm297_vm0, %v1649_v9  ;;  %366 = vmatpush.msra.mxu2 %v343_v18 }
  0x56   : > { %385 = vmatpush.msra.mxu3 %v346_v30  ;;  %p1409_p12 = pneg %p1408_p3 }
  0x57   : > { %367 = vmatpush.msra.mxu2 %v341_v19 }
  0x58   : > { %1139 = vmatpush.xpose.msk.msra.mxu0 %vm297_vm0, %v1649_v9  ;;  %1131 = vmatmul.msk.f32.vlgmr.msra.gmra.mxu2 %vm297_vm0, %v1649_v9  ;;  %p1414_p10 = pnand %p1413_p8, %p1409_p12 }
  0x59   : > { %386 = vmatpush.msra.mxu3 %v344_v31 }
  0x5b   : > { %387 = vmatpush.msra.mxu3 %v342_v32 }
  0x5c   : > { %1132 = vmatmul.msk.f32.vlgmr.msra.gmra.mxu3 %vm297_vm0, %v1649_v9 }
  0xd0   : > { %v318_v10 = vpop.f32.mrf.mxu0 }
  0xd1   : > { %613 = vrot.lane.b32.xlu2 %v318_v10, %s1474_s13  ;;  %440 = vrot.lane.b32.xlu0 %v318_v10, %s1475_s9  ;;  %v338_v11 = vpop.f32.mrf.mxu1 }
  0xd2   : > { %1134 = vmatmul.msk.f32.vlgmr.msrb.gmra.mxu0 %vm297_vm0, %v318_v10 }
  0xd3   : > { %1145 = vmatpush.xpose.msk.msrb.mxu0 %vm297_vm0, %v1649_v9 }
  0xd9   : > { %759 = vrot.lane.b32.xlu2 %v338_v11, %s1475_s9 }
  0xdb   : > { %v1692_v36 = vpop.f32.mrf.mxu2 }
  0xdc   : > { %533 = vmatpush.msrb.mxu3 %v1692_v36 }
  0xe1   : > { %538 = vrot.lane.b32.xlu2 %v318_v10, %s1476_s10 }
  0xe9   : > { %910 = vrot.lane.b32.xlu2 %v338_v11, %s1474_s13 }
  0xf1   : > { %835 = vrot.lane.b32.xlu2 %v338_v11, %s1476_s10 }
 0x12b   : > { %v1668_v12 = vpop.permute.xlu2 %613 }
 0x133   : > { %v1670_v13 = vpop.permute.xlu2 %759 }
 0x13b   : > { %v539_v14 = vpop.permute.xlu2 %538 }
 0x13c   : > { %1140 = vmatmul.msk.f32.vlgmr.msra.gmra.mxu0 %vm297_vm0, %v539_v14 }
 0x13d   : > { %1151 = vmatpush.xpose.msk.msra.mxu0 %vm297_vm0, %v1649_v9 }
 0x143   : > { %v441_v15 = vpop.permute.xlu0 %440  ;;  %v1677_v20 = vpop.permute.xlu2 %910 }
 0x144   : > { %1136 = vmatmul.msk.f32.vlgmr.msrb.gmra.mxu1 %vm297_vm0, %v441_v15  ;;  %1146 = vmatmul.msk.f32.vlgmr.msrb.gmra.mxu0 %vm297_vm0, %v338_v11 }
 0x14b   : > { %v836_v21 = vpop.permute.xlu2 %835 }
 0x14c   : > { %1152 = vmatmul.msk.f32.vlgmr.msra.gmra.mxu0 %vm297_vm0, %v836_v21 }
 0x14f   : > { %v1682_v22 = vpop.f32.mrf.mxu0 }
 0x150   : > { %v416_v41 = vsel %vm415_vm1, %v1682_v22, -inf }
 0x1b9   : > { %v559_v25 = vpop.f32.mrf.mxu0 }
 0x1ba   : > { %v562_v26 = vsel %vm415_vm1, %v559_v25, -inf }
 0x1c1   : > { %v461_v23 = vpop.f32.mrf.mxu1  ;;  %v1686_v27 = vpop.f32.mrf.mxu0 }
 0x1c2   : > { %v464_v24 = vsel %vm415_vm1, %v461_v23, -inf  ;;  %v711_v28 = vsel %vm415_vm1, %v1686_v27, -inf }
 0x1c3   : > { %465 = vmax.xlane.f32.xlu0 %v464_v24 }
 0x1c9   : > { %v1700_v43 = vpop.f32.mrf.mxu0 }
 0x1ca   : > { %v859_v44 = vsel %vm415_vm1, %v1700_v43, -inf }
 0x1cb   : > { %563 = vmax.xlane.f32.xlu0 %v562_v26 }
 0x1d3   : > { %712 = vmax.xlane.f32.xlu0 %v711_v28 }
 0x236   : > { %v466_v33 = vpop.xlane.xlu0 %465 }
 0x237   : > { %v467_v34 = vsub.f32 %v461_v23, %v466_v33 }
 0x239   : > { %v468_v35 = vmul.f32 1.442695, %v467_v34 }
 0x23b   : > { %1238 = vpow2.f32 %v468_v35 }
 0x23e   : > { %v564_v39 = vpop.xlane.xlu0 %563 }
 0x23f   : > { %v565_v40 = vsub.f32 %v559_v25, %v564_v39 }
 0x241   : > { %v1239_v37 = vpop.eup %1238  ;;  %v566_v42 = vmul.f32 1.442695, %v565_v40 }
 0x242   : > { %v470_v38 = vsel %vm415_vm1, %v1239_v37, 0.0 }
 0x243   : > { %471 = vadd.xlane.f32.xlu1 %v470_v38  ;;  %1240 = vpow2.f32 %v566_v42 }
 0x246   : > { %v713_v18 = vpop.xlane.xlu0 %712 }
 0x247   : > { %v714_v19 = vsub.f32 %v1686_v27, %v713_v18 }
 0x249   : > { %v1241_v45 = vpop.eup %1240 }
 0x24a   : > { %v568_v46 = vsel %vm415_vm1, %v1241_v45, 0.0 }
 0x25c   : > { %489 = vrot.lane.b32.xlu1 %v1692_v36, %s1475_s9 }
 0x286   : > { %417 = vmax.xlane.f32.xlu1 %v416_v41 }
 0x28e   : > { %860 = vmax.xlane.f32.xlu1 %v859_v44 }
 0x296   : > { %569 = vadd.xlane.f32.xlu1 %v568_v46 }
 0x2af   : > { %586 = vrot.lane.b32.xlu1 %v1692_v36, %s1476_s10 }
 0x2b6   : > { %v472_v47 = vpop.xlane.xlu1 %471 }
 0x2b7   : > { %1242 = vrcp.f32 %v472_v47  ;;  %v484_v53 = vand.u32 2147483648, %v472_v47  ;;  %vm478_vm3 = vweird.f32 %v472_v47  ;;  %v482_v54 = vand.u32 2147483647, %v472_v47 }
 0x2b9   : > { %v485_v56 = vor.u32 1.1754944e-38, %v484_v53  ;;  %vm483_vm5 = vcmp.eq.f32.partialorder %v482_v54, 8.507059e+37 }
 0x2bd   : > { %v1243_v48 = vpop.eup %1242 }
 0x2be   : > { %v474_v49 = vmul.f32 %v1243_v48, %v472_v47  ;;  %vm479_vm2 = vweird.f32 %v1243_v48 }
 0x2bf   : > { %vm480_vm4 = vmor %vm478_vm3, %vm479_vm2 }
 0x2c0   : > { %v475_v50 = vsub.f32 1.0, %v474_v49 }
 0x2c2   : > { %v476_v51 = vmul.f32 %v1243_v48, %v475_v50 }
 0x2c4   : > { %v477_v52 = vadd.f32 %v1243_v48, %v476_v51 }
 0x2c6   : > { %v481_v55 = vsel %vm480_vm4, %v1243_v48, %v477_v52 }
 0x2c7   : > { %v486_v57 = vsel %vm483_vm5, %v485_v56, %v481_v55 }
 0x2c8   : > { %v487_v59 = vmul.f32 %v1239_v37, %v486_v57 }
 0x2ce   : > { %v490_v58 = vpop.permute.xlu1 %489 }
 0x2cf   : > { %510 = vmatpush.msrb.mxu2 %v490_v58 }
 0x2d0   : > { %1137 = vmatmul.msk.f32.vlgmr.msrb.gmra.mxu2 %vm415_vm1, %v487_v59 }
 0x2d1   : > { %1142 = vmatpush.xpose.msk.msra.mxu2 %vm297_vm0, %v1649_v9 }
 0x2d5   : > { %1148 = vmatpush.xpose.msk.msrb.mxu2 %vm297_vm0, %v1649_v9 }
 0x2d8   : > { %1143 = vmatmul.msk.f32.vlgmr.msra.gmra.mxu2 %vm297_vm0, %v1668_v12 }
 0x2d9   : > { %1154 = vmatpush.xpose.msk.msra.mxu2 %vm297_vm0, %v1649_v9 }
 0x2e0   : > { %1149 = vmatmul.msk.f32.vlgmr.msrb.gmra.mxu2 %vm297_vm0, %v1670_v13 }
 0x2e8   : > { %1155 = vmatmul.msk.f32.vlgmr.msra.gmra.mxu2 %vm297_vm0, %v1677_v20 }
 0x2f9   : > { %v418_v60 = vpop.xlane.xlu1 %417 }
 0x2fa   : > { %v419_v61 = vsub.f32 %v1682_v22, %v418_v60  ;;  %v715_v22 = vmul.f32 1.442695, %v714_v19 }
 0x2fc   : > { %v420_v62 = vmul.f32 1.442695, %v419_v61 }
 0x2fe   : > { %1244 = vpow2.f32 %v420_v62 }
 0x301   : > { %v861_v63 = vpop.xlane.xlu1 %860 }
 0x302   : > { %v862_v23 = vsub.f32 %v1700_v43, %v861_v63 }
 0x304   : > { %v1721_v0 = vpop.eup %1244  ;;  %v863_v26 = vmul.f32 1.442695, %v862_v23 }
 0x305   : > { %v422_v1 = vsel %vm415_vm1, %v1721_v0, 0.0 }
 0x306   : > { %423 = vadd.xlane.f32.xlu2 %v422_v1 }
 0x309   : > { %v570_v2 = vpop.xlane.xlu1 %569 }
 0x30a   : > { %1246 = vrcp.f32 %v570_v2  ;;  %v582_v8 = vand.u32 2147483648, %v570_v2  ;;  %vm576_vm7 = vweird.f32 %v570_v2  ;;  %v580_v9 = vand.u32 2147483647, %v570_v2 }
 0x30b   : > { %1248 = vpow2.f32 %v715_v22 }
 0x30c   : > { %v583_v11 = vor.u32 1.1754944e-38, %v582_v8  ;;  %vm581_vm9 = vcmp.eq.f32.partialorder %v580_v9, 8.507059e+37  ;;  %1250 = vpow2.f32 %v863_v26 }
 0x310   : > { %v1247_v3 = vpop.eup %1246 }
 0x311   : > { %v572_v4 = vmul.f32 %v1247_v3, %v570_v2  ;;  %vm577_vm6 = vweird.f32 %v1247_v3  ;;  %v1733_v28 = vpop.eup %1248 }
 0x312   : > { %vm578_vm8 = vmor %vm576_vm7, %vm577_vm6  ;;  %v717_v29 = vsel %vm415_vm1, %v1733_v28, 0.0  ;;  %v1739_v27 = vpop.eup %1250 }
 0x313   : > { %v573_v5 = vsub.f32 1.0, %v572_v4  ;;  %v865_v31 = vsel %vm415_vm1, %v1739_v27, 0.0 }
 0x315   : > { %v574_v6 = vmul.f32 %v1247_v3, %v573_v5 }
 0x317   : > { %v575_v7 = vadd.f32 %v1247_v3, %v574_v6 }
 0x319   : > { %v579_v10 = vsel %vm578_vm8, %v1247_v3, %v575_v7 }
 0x31a   : > { %v584_v12 = vsel %vm581_vm9, %v583_v11, %v579_v10 }
 0x31b   : > { %v585_v14 = vmul.f32 %v1241_v45, %v584_v12  ;;  %v389_v45 = vpop.f32.mrf.mxu3 }
 0x321   : > { %v587_v13 = vpop.permute.xlu1 %586 }
 0x322   : > { %607 = vmatpush.msra.mxu1 %v587_v13 }
 0x323   : > { %1141 = vmatmul.msk.f32.vlgmr.msra.gmra.mxu1 %vm415_vm1, %v585_v14 }
 0x324   : > { %753 = vmatpush.msrb.mxu1 %v389_v45 }
 0x353   : > { %v1726_v15 = vpop.f32.mrf.mxu2 }
 0x35b   : > { %v634_v16 = vpop.f32.mrf.mxu2 }
 0x35c   : > { %v637_v17 = vsel %vm415_vm1, %v634_v16, -inf }
 0x35d   : > { %638 = vmax.xlane.f32.xlu2 %v637_v17 }
 0x363   : > { %v780_v20 = vpop.f32.mrf.mxu2 }
 0x364   : > { %v783_v21 = vsel %vm415_vm1, %v780_v20, -inf }
 0x365   : > { %784 = vmax.xlane.f32.xlu0 %v783_v21 }
 0x36b   : > { %v931_v24 = vpop.f32.mrf.mxu2 }
 0x36c   : > { %v934_v25 = vsel %vm415_vm1, %v931_v24, -inf }
 0x36d   : > { %935 = vmax.xlane.f32.xlu0 %v934_v25 }
 0x375   : > { %718 = vadd.xlane.f32.xlu0 %v717_v29  ;;  %661 = vrot.lane.b32.xlu2 %v1692_v36, %s1474_s13 }
 0x379   : > { %v424_v30 = vpop.xlane.xlu2 %423 }
 0x37a   : > { %1252 = vrcp.f32 %v424_v30  ;;  %v436_v35 = vand.u32 2147483648, %v424_v30  ;;  %v434_v38 = vand.u32 2147483647, %v424_v30  ;;  %vm430_vm11 = vweird.f32 %v424_v30 }
 0x37c   : > { %v437_v40 = vor.u32 1.1754944e-38, %v436_v35  ;;  %vm435_vm13 = vcmp.eq.f32.partialorder %v434_v38, 8.507059e+37 }
 0x37d   : > { %866 = vadd.xlane.f32.xlu0 %v865_v31 }
 0x380   : > { %v1253_v32 = vpop.eup %1252 }
 0x381   : > { %v426_v33 = vmul.f32 %v1253_v32, %v424_v30  ;;  %vm431_vm10 = vweird.f32 %v1253_v32 }
 0x382   : > { %vm432_vm12 = vmor %vm430_vm11, %vm431_vm10 }
 0x383   : > { %v427_v34 = vsub.f32 1.0, %v426_v33 }
 0x385   : > { %v428_v37 = vmul.f32 %v1253_v32, %v427_v34 }
 0x387   : > { %v429_v39 = vadd.f32 %v1253_v32, %v428_v37 }
 0x389   : > { %v433_v36 = vsel %vm432_vm12, %v1253_v32, %v429_v39 }
 0x38a   : > { %v438_v41 = vsel %vm435_vm13, %v437_v40, %v433_v36 }
 0x38b   : > { %v439_v42 = vmul.f32 %v1721_v0, %v438_v41 }
 0x38d   : > { %1138 = vmatmul.msk.f32.vlgmr.msrb.gmra.mxu3 %vm415_vm1, %v439_v42 }
 0x3d0   : > { %v639_v43 = vpop.xlane.xlu2 %638 }
 0x3d1   : > { %v640_v44 = vsub.f32 %v634_v16, %v639_v43 }
 0x3d3   : > { %v641_v46 = vmul.f32 1.442695, %v640_v44 }
 0x3d5   : > { %1254 = vpow2.f32 %v641_v46 }
 0x3d8   : > { %v785_v47 = vpop.xlane.xlu0 %784  ;;  %v662_v48 = vpop.permute.xlu2 %661 }
 0x3d9   : > { %v786_v49 = vsub.f32 %v780_v20, %v785_v47  ;;  %682 = vmatpush.msra.mxu3 %v662_v48 }
 0x3db   : > { %v1745_v50 = vpop.eup %1254  ;;  %v787_v51 = vmul.f32 1.442695, %v786_v49 }
 0x3dc   : > { %v643_v52 = vsel %vm415_vm1, %v1745_v50, 0.0 }
 0x3dd   : > { %1256 = vpow2.f32 %v787_v51  ;;  %644 = vadd.xlane.f32.xlu0 %v643_v52 }
 0x3e0   : > { %v936_v53 = vpop.xlane.xlu0 %935 }
 0x3e1   : > { %v937_v54 = vsub.f32 %v931_v24, %v936_v53 }
 0x3e3   : > { %v1749_v55 = vpop.eup %1256  ;;  %v938_v56 = vmul.f32 1.442695, %v937_v54 }
 0x3e4   : > { %v789_v57 = vsel %vm415_vm1, %v1749_v55, 0.0 }
 0x3e5   : > { %1258 = vpow2.f32 %v938_v56  ;;  %790 = vadd.xlane.f32.xlu2 %v789_v57 }
 0x3e8   : > { %v719_v58 = vpop.xlane.xlu0 %718 }
 0x3e9   : > { %1260 = vrcp.f32 %v719_v58  ;;  %v731_v0 = vand.u32 2147483648, %v719_v58  ;;  %v729_v2 = vand.u32 2147483647, %v719_v58  ;;  %vm725_vm15 = vweird.f32 %v719_v58 }
 0x3eb   : > { %v1753_v59 = vpop.eup %1258  ;;  %v732_v4 = vor.u32 1.1754944e-38, %v731_v0  ;;  %vm730_vm3 = vcmp.eq.f32.partialorder %v729_v2, 8.507059e+37 }
 0x3ec   : > { %v940_v60 = vsel %vm415_vm1, %v1753_v59, 0.0 }
 0x3ed   : > { %941 = vadd.xlane.f32.xlu1 %v940_v60 }
 0x3ef   : > { %v1261_v61 = vpop.eup %1260 }
 0x3f0   : > { %v721_v62 = vmul.f32 %v1261_v61, %v719_v58  ;;  %vm726_vm14 = vweird.f32 %v1261_v61  ;;  %v1762_v8 = vpop.xlane.xlu0 %866 }
 0x3f1   : > { %808 = vrot.lane.b32.xlu0 %v389_v45, %s1475_s9  ;;  %vm727_vm2 = vmor %vm725_vm15, %vm726_vm14  ;;  %v877_v52 = vand.u32 2147483647, %v1762_v8 }
 0x3f2   : > { %v722_v63 = vsub.f32 1.0, %v721_v62 }
 0x3f4   : > { %v723_v1 = vmul.f32 %v1261_v61, %v722_v63  ;;  %v609_v63 = vpop.f32.mrf.mxu1 }
 0x3f6   : > { %v724_v3 = vadd.f32 %v1261_v61, %v723_v1 }
 0x3f8   : > { %v728_v5 = vsel %vm727_vm2, %v1261_v61, %v724_v3  ;;  %vm873_vm2 = vweird.f32 %v1762_v8 }
 0x3f9   : > { %v733_v6 = vsel %vm730_vm3, %v732_v4, %v728_v5 }
 0x3fa   : > { %v734_v7 = vmul.f32 %v1733_v28, %v733_v6 }
 0x3fc   : > { %1147 = vmatmul.msk.f32.vlgmr.msrb.gmra.mxu1 %vm415_vm1, %v734_v7 }
 0x3fd   : > { %958 = vrot.lane.b32.xlu2 %v389_v45, %s1474_s13 }
 0x406   : > { %883 = vrot.lane.b32.xlu1 %v389_v45, %s1476_s10 }
 0x410   : > { %v535_v62 = vpop.f32.mrf.mxu3 }
 0x411   : > { %v536_v1 = vadd.f32 %v535_v62, %v1726_v15 }
 0x413   : > { %v612_v2 = vadd.f32 %v609_v63, %v536_v1 }
 0x450   : > { %v645_v9 = vpop.xlane.xlu0 %644 }
 0x451   : > { %1262 = vrcp.f32 %v645_v9  ;;  %v657_v14 = vand.u32 2147483648, %v645_v9  ;;  %v655_v17 = vand.u32 2147483647, %v645_v9  ;;  %vm651_vm5 = vweird.f32 %v645_v9 }
 0x452   : > { %1264 = vrcp.f32 %v1762_v8 }
 0x453   : > { %v658_v21 = vor.u32 1.1754944e-38, %v657_v14  ;;  %vm656_vm7 = vcmp.eq.f32.partialorder %v655_v17, 8.507059e+37 }
 0x457   : > { %v1263_v10 = vpop.eup %1262 }
 0x458   : > { %v647_v11 = vmul.f32 %v1263_v10, %v645_v9  ;;  %v791_v12 = vpop.xlane.xlu2 %790  ;;  %vm652_vm4 = vweird.f32 %v1263_v10  ;;  %v1265_v18 = vpop.eup %1264 }
 0x459   : > { %1266 = vrcp.f32 %v791_v12  ;;  %vm653_vm6 = vmor %vm651_vm5, %vm652_vm4  ;;  %v869_v26 = vmul.f32 %v1265_v18, %v1762_v8  ;;  %v803_v30 = vand.u32 2147483648, %v791_v12  ;;  %v801_v33 = vand.u32 2147483647, %v791_v12 }
 0x45a   : > { %v648_v13 = vsub.f32 1.0, %v647_v11  ;;  %vm797_vm9 = vweird.f32 %v791_v12  ;;  %vm874_vm13 = vweird.f32 %v1265_v18  ;;  %vm878_vm5 = vcmp.eq.f32.partialorder %v877_v52, 8.507059e+37 }
 0x45b   : > { %v870_v35 = vsub.f32 1.0, %v869_v26  ;;  %v804_v39 = vor.u32 1.1754944e-38, %v803_v30  ;;  %vm802_vm11 = vcmp.eq.f32.partialorder %v801_v33, 8.507059e+37  ;;  %vm875_vm4 = vmor %vm873_vm2, %vm874_vm13 }
 0x45c   : > { %v649_v16 = vmul.f32 %v1263_v10, %v648_v13 }
 0x45d   : > { %v871_v42 = vmul.f32 %v1265_v18, %v870_v35 }
 0x45e   : > { %v650_v19 = vadd.f32 %v1263_v10, %v649_v16 }
 0x45f   : > { %v1267_v20 = vpop.eup %1266  ;;  %v872_v48 = vadd.f32 %v1265_v18, %v871_v42 }
 0x460   : > { %v654_v22 = vsel %vm653_vm6, %v1263_v10, %v650_v19  ;;  %v793_v23 = vmul.f32 %v1267_v20, %v791_v12  ;;  %v942_v24 = vpop.xlane.xlu1 %941  ;;  %vm798_vm8 = vweird.f32 %v1267_v20  ;;  %v959_v34 = vpop.permute.xlu2 %958 }
 0x461   : > { %v659_v25 = vsel %vm656_vm7, %v658_v21, %v654_v22  ;;  %1268 = vrcp.f32 %v942_v24  ;;  %vm799_vm10 = vmor %vm797_vm9, %vm798_vm8  ;;  %v954_v45 = vand.u32 2147483648, %v942_v24  ;;  %v952_v47 = vand.u32 2147483647, %v942_v24 }
 0x462   : > { %v794_v28 = vsub.f32 1.0, %v793_v23  ;;  %v660_v29 = vmul.f32 %v1745_v50, %v659_v25  ;;  %vm948_vm14 = vweird.f32 %v942_v24  ;;  %v879_v50 = vand.u32 2147483648, %v1762_v8 }
 0x463   : > { %v809_v31 = vpop.permute.xlu0 %808  ;;  %v955_v51 = vor.u32 1.1754944e-38, %v954_v45  ;;  %vm953_vm3 = vcmp.eq.f32.partialorder %v952_v47, 8.507059e+37 }
 0x464   : > { %v795_v32 = vmul.f32 %v1267_v20, %v794_v28  ;;  %1144 = vmatmul.msk.f32.vlgmr.msra.gmra.mxu3 %vm415_vm1, %v660_v29  ;;  %v880_v57 = vor.u32 1.1754944e-38, %v879_v50 }
 0x465   : > { %829 = vmatpush.msrb.mxu3 %v809_v31 }
 0x466   : > { %v796_v37 = vadd.f32 %v1267_v20, %v795_v32 }
 0x467   : > { %979 = vmatpush.msra.mxu3 %v959_v34  ;;  %v1269_v38 = vpop.eup %1268 }
 0x468   : > { %v800_v40 = vsel %vm799_vm10, %v1267_v20, %v796_v37  ;;  %v944_v36 = vmul.f32 %v1269_v38, %v942_v24  ;;  %vm949_vm12 = vweird.f32 %v1269_v38 }
 0x469   : > { %v805_v41 = vsel %vm802_vm11, %v804_v39, %v800_v40  ;;  %vm950_vm15 = vmor %vm948_vm14, %vm949_vm12 }
 0x46a   : > { %v945_v43 = vsub.f32 1.0, %v944_v36  ;;  %v806_v44 = vmul.f32 %v1749_v55, %v805_v41  ;;  %v876_v55 = vsel %vm875_vm4, %v1265_v18, %v872_v48 }
 0x46b   : > { %v881_v58 = vsel %vm878_vm5, %v880_v57, %v876_v55 }
 0x46c   : > { %v946_v46 = vmul.f32 %v1269_v38, %v945_v43  ;;  %1150 = vmatmul.msk.f32.vlgmr.msrb.gmra.mxu3 %vm415_vm1, %v806_v44  ;;  %v882_v61 = vmul.f32 %v1739_v27, %v881_v58 }
 0x46e   : > { %v947_v49 = vadd.f32 %v1269_v38, %v946_v46 }
 0x470   : > { %v951_v53 = vsel %vm950_vm15, %v1269_v38, %v947_v49 }
 0x471   : > { %v956_v54 = vsel %vm953_vm3, %v955_v51, %v951_v53 }
 0x472   : > { %v957_v56 = vmul.f32 %v1753_v59, %v956_v54 }
 0x474   : > { %1156 = vmatmul.msk.f32.vlgmr.msra.gmra.mxu3 %vm415_vm1, %v957_v56 }
 0x478   : > { %v884_v60 = vpop.permute.xlu1 %883 }
 0x479   : > { %904 = vmatpush.msra.mxu1 %v884_v60  ;;  %v755_v59 = vpop.f32.mrf.mxu1 }
 0x47a   : > { %1153 = vmatmul.msk.f32.vlgmr.msra.gmra.mxu1 %vm415_vm1, %v882_v61 }
 0x4e7   : > { %v684_v0 = vpop.f32.mrf.mxu3 }
 0x4e8   : > { %v687_v4 = vadd.f32 %v684_v0, %v612_v2 }
 0x4ea   : > { %v758_v5 = vadd.f32 %v755_v59, %v687_v4 }
 0x4ef   : > { %v831_v3 = vpop.f32.mrf.mxu3 }
 0x4f0   : > { %v834_v27 = vadd.f32 %v831_v3, %v758_v5 }
 0x4f7   : > { %v906_v6 = vpop.f32.mrf.mxu1  ;;  %v981_v8 = vpop.f32.mrf.mxu3 }
 0x4f8   : > { %v909_v7 = vadd.f32 %v906_v6, %v834_v27 }
 0x4fa   : > { %v984_v15 = vadd.f32 %v981_v8, %v909_v7 }
 0x4fc   : > { %985 = vst.msk [vmem:[%s286_s27] sm:$0xff] %vm297_vm0, %v984_v15 }
 0x4fd   : > { %1417 = shalt.err (!%p1414_p10)
}
 0x4fe   : > { %1173 = dma.vmem_to_hbm [thread:$0]  (%p1571_p4), %s1000_s25, 128, %s1002_s26, %s987_s28  }
 0x4ff PF: > { %s1013_s21 = sand.u32 1, %s1456_s15   ;;  %p1829_p11 = scmp.ge.s32.totalorder %s1468_s18, 2 }
 0x500   : > { %s1014_s23 = scalar_lea.sflag [#allocation4], %s1013_s21 }
 0x501   : > { %p1190_p5 = pnand %p1829_p11, %p1575_p6 }
 0x503   : > { %p1191_p13 = pneg %p1190_p5 }
 0x505   : > { %1451 = dma.done.wait (%p1191_p13), %s1014_s23, 128  }
 0x506   : > { %1453 = vsyncadd (%p1191_p13), %s1014_s23, 4294967168  ;;  %s1830_s5 = sld [smem:[#allocation16_spill]]  ;;  %p21_p0 = scmp.ge.s32.totalorder %s1545_s8, 4  }
 0x507   : > { %s1831_s15 = smov %s1460_s16  ;;  %s1832_s16 = smov %s1464_s17 }
 0x508   : > { %s1834_s18 = smov %s1545_s8  ;;  %23 = sbr.rel (!%p21_p0) target bundleno = 11 (0xb), region = 102 }
 0x50c   : > { %s1833_s17 = smov %s1830_s5 }
 0x50d   :  { %1020 = vsyncpa [#allocation3], 1 }
 0x50e   :  { %1022 = vsyncpa [#allocation3 + $0x1], 1 }
 0x50f   :  { %1023 = vsyncpa [#allocation6], 1 }
 0x510   :  { %1025 = vsyncpa [#allocation6 + $0x1], 1 }
 0x511   :  { %1026 = vsyncpa [#allocation9], 1 }
 0x512   :  { %1027 = vsyncpa [#allocation4], 1 }
 0x513   :  { %1029 = vsyncpa [#allocation4 + $0x1], 1 }

</bundles_post_ra>
